<compile_context>
chip_gen: v7x
topology: tpu7x:2x2x1
jax: 0.10.0
libtpu: 0.0.40
codegen_flags: <defaults>
</compile_context>

<pallas_src>
import math
import functools

import jax
import jax.numpy as jnp
from jax.experimental import pallas as pl
from jax.experimental.pallas import tpu as pltpu


# --------------------------------------------------------------------------- #
# helpers
# --------------------------------------------------------------------------- #
def _cdiv(a, b):
    return -(-a // b)


def _round_up(a, b):
    return _cdiv(a, b) * b


@functools.lru_cache(maxsize=1)
def _vmem_capacity_bytes():
    """Physical per-core VMEM; conservative v7x fallback if the query fails."""
    try:
        info = pltpu.get_tpu_info()
        for attr in ("vmem_capacity_bytes", "vmem_size_bytes", "vmem_bytes"):
            v = getattr(info, attr, None)
            if v:
                return int(v)
    except Exception:
        pass
    return 64 << 20


def _spec(shape, index_map, buffer_count=None):
    """BlockSpec with optional explicit buffer count (falls back cleanly)."""
    if buffer_count is not None:
        try:
            return pl.BlockSpec(shape, index_map,
                                pipeline_mode=pl.Buffered(buffer_count))
        except TypeError:
            pass  # older BlockSpec signature without pipeline_mode
    return pl.BlockSpec(shape, index_map)


# --------------------------------------------------------------------------- #
# kernels
# --------------------------------------------------------------------------- #
def _resident_kernel(x_ref, w_ref, o_ref):
    # Weight block is resident in VMEM (constant index along the inner M axis,
    # single-buffered): one MXU matmul per step, f32 accumulation, one cast.
    o_ref[...] = jnp.dot(
        x_ref[...], w_ref[...], preferred_element_type=jnp.float32
    ).astype(o_ref.dtype)


def _stream_kernel_f32(x_ref, w_ref, o_ref):
    # f32 output: the output block is revisited across the K ("arbitrary",
    # last) grid axis, so accumulate directly into it — no scratch needed.
    @pl.when(pl.program_id(2) == 0)
    def _():
        o_ref[...] = jnp.zeros_like(o_ref)

    o_ref[...] += jnp.dot(
        x_ref[...], w_ref[...], preferred_element_type=jnp.float32
    )


def _stream_kernel_acc(x_ref, w_ref, o_ref, acc_ref):
    # Non-f32 output: accumulate in an f32 scratch, cast once at the end.
    @pl.when(pl.program_id(2) == 0)
    def _():
        acc_ref[...] = jnp.zeros_like(acc_ref)

    acc_ref[...] += jnp.dot(
        x_ref[...], w_ref[...], preferred_element_type=jnp.float32
    )

    @pl.when(pl.program_id(2) == pl.num_programs(2) - 1)
    def _():
        o_ref[...] = acc_ref[...].astype(o_ref.dtype)


# --------------------------------------------------------------------------- #
# wrapper
# --------------------------------------------------------------------------- #
@functools.partial(
    jax.jit,
    static_argnames=("tm", "tn", "tk", "cast_to_bf16", "force_stream"),
)
def w_ju_forward(x, w_m, *, tm=1024, tn=1024, tk=512,
                 cast_to_bf16=False, force_stream=False):
    """y = x @ w_m via a Pallas TPU kernel.

    x:   (..., c)
    w_m: (c, dime)
    out: (..., dime)

    cast_to_bf16: optionally cast inputs to bf16 (f32 accumulation kept) for
                  bf16-native MXU throughput on v6e/v7x.
    force_stream: testing hook — force the K-streamed path.
    """
    *lead, c = x.shape
    c_w, dime = w_m.shape
    if c != c_w:
        raise ValueError(f"contraction mismatch: {c} vs {c_w}")
    for t, nm in ((tm, "tm"), (tn, "tn"), (tk, "tk")):
        if t % 128 != 0:
            raise ValueError(f"{nm} must be a multiple of 128, got {t}")

    out_dtype = jnp.result_type(x.dtype, w_m.dtype)

    m = 1
    for d in lead:
        m *= d
    x2d = x.reshape(m, c)
    w2d = w_m

    if cast_to_bf16:
        x2d = x2d.astype(jnp.bfloat16)
        w2d = w2d.astype(jnp.bfloat16)

    x_isz = jnp.dtype(x2d.dtype).itemsize
    w_isz = jnp.dtype(w2d.dtype).itemsize
    o_isz = jnp.dtype(out_dtype).itemsize

    # Generation-aware VMEM accounting: budget guards the *real* buffer
    # footprint (with headroom for Mosaic internal scratch); vmem_limit is the
    # compiler permission (never the full physical capacity).
    cap = _vmem_capacity_bytes()
    budget = int(cap * 0.70)
    vmem_limit = int(cap * 0.80)

    # ---------------- weight-resident fast path ------------------------------
    # Weight kept fully in VMEM, single-buffered; no K grid axis, no f32
    # accumulator traffic, no re-reads of the weight across M tiles.
    w_res_bytes = c * dime * w_isz

    tm_res = m if m <= tm else tm
    m_tiles_res = _cdiv(m, tm_res)
    if m_tiles_res < 2 and dime >= 256:
        # Only one M tile: split N so both v7x TensorCores get parallel work.
        tn_res = _round_up(_cdiv(dime, 2), 128)
    else:
        tn_res = dime
    n_tiles_res = _cdiv(dime, tn_res)

    def _res_footprint(tm_e):
        return (w_res_bytes                       # single-buffered weight
                + 2 * tm_e * c * x_isz            # double-buffered x tile
                + 2 * tm_e * tn_res * o_isz)      # double-buffered out tile

    use_resident = (not force_stream) and (w_res_bytes <= budget)
    if use_resident:
        while _res_footprint(tm_res) > budget and tm_res > 128:
            tm_res = max(128, (tm_res // 256) * 128)   # halve, keep /128
        use_resident = _res_footprint(tm_res) <= budget

    if use_resident:
        m_tiles_res = _cdiv(m, tm_res)
        cost = pl.CostEstimate(
            flops=2 * m * c * dime,
            transcendentals=0,
            bytes_accessed=(n_tiles_res * m * c * x_isz
                            + c * dime * w_isz
                            + m * dime * o_isz),
        )
        out2d = pl.pallas_call(
            _resident_kernel,
            out_shape=jax.ShapeDtypeStruct((m, dime), out_dtype),
            grid_spec=pltpu.PrefetchScalarGridSpec(
                num_scalar_prefetch=0,
                # N outer, M inner: the weight block only changes on the outer
                # axis and stays resident across all inner M steps.
                grid=(n_tiles_res, m_tiles_res),
                in_specs=[
                    _spec((tm_res, c), lambda j, i: (i, 0)),
                    _spec((c, tn_res), lambda j, i: (0, j), buffer_count=1),
                ],
                out_specs=_spec((tm_res, tn_res), lambda j, i: (i, j)),
            ),
            compiler_params=pltpu.CompilerParams(
                dimension_semantics=("parallel", "parallel"),
                vmem_limit_bytes=vmem_limit,
            ),
            cost_estimate=cost,
        )(x2d, w2d)
        return out2d.reshape(*lead, dime)

    # ---------------- K-streamed accumulator path ----------------------------
    tm_s = m if m <= tm else tm
    tn_s = dime if dime <= tn else tn
    tk_s = c if c <= tk else tk

    need_scratch = (out_dtype != jnp.float32)

    def _stream_footprint(tm_e, tn_e, tk_e):
        fp = (2 * tm_e * tk_e * x_isz
              + 2 * tk_e * tn_e * w_isz
              + 2 * tm_e * tn_e * o_isz)
        if need_scratch:
            fp += tm_e * tn_e * 4
        return fp

    # Shrink tiles (footprint guard, not just the limit): prefer K, then N,
    # then M, keeping every shrunken tile a multiple of 128.
    while _stream_footprint(tm_s, tn_s, tk_s) > budget:
        if tk_s > 256:
            tk_s = max(256, (tk_s // 256) * 128)
        elif tn_s > 256:
            tn_s = max(256, (tn_s // 256) * 128)
        elif tm_s > 256:
            tm_s = max(256, (tm_s // 256) * 128)
        else:
            break

    if tk_s > c:
        tk_s = c
    kp = _round_up(c, tk_s)
    x_in, w_in = x2d, w2d
    if kp != c:
        # Zero-pad K only (exact); M/N are never padded (cdiv grids instead).
        x_in = jnp.pad(x2d, ((0, 0), (0, kp - c)))
        w_in = jnp.pad(w2d, ((0, kp - c), (0, 0)))

    m_tiles = _cdiv(m, tm_s)
    n_tiles = _cdiv(dime, tn_s)
    k_tiles = kp // tk_s

    cost = pl.CostEstimate(
        flops=2 * m * c * dime,
        transcendentals=0,
        bytes_accessed=(n_tiles * m * kp * x_isz      # x re-read per N tile
                        + m_tiles * kp * dime * w_isz  # w re-read per M tile
                        + m * dime * o_isz),
    )

    in_specs = [
        # TODO(synk): if profiling shows exposed DMA at small tk, deepen the x
        # pipeline with pipeline_mode=pl.Buffered(3) on this spec only.
        pl.BlockSpec((tm_s, tk_s), lambda i, j, k: (i, k)),
        pl.BlockSpec((tk_s, tn_s), lambda i, j, k: (k, j)),
    ]
    out_spec = pl.BlockSpec((tm_s, tn_s), lambda i, j, k: (i, j))

    if need_scratch:
        kernel = _stream_kernel_acc
        scratch = [pltpu.VMEM((tm_s, tn_s), jnp.float32)]
    else:
        kernel = _stream_kernel_f32
        scratch = []

    out2d = pl.pallas_call(
        kernel,
        out_shape=jax.ShapeDtypeStruct((m, dime), out_dtype),
        grid_spec=pltpu.PrefetchScalarGridSpec(
            num_scalar_prefetch=0,
            grid=(m_tiles, n_tiles, k_tiles),
            in_specs=in_specs,
            out_specs=out_spec,
            scratch_shapes=scratch,
        ),
        compiler_params=pltpu.CompilerParams(
            dimension_semantics=("parallel", "parallel", "arbitrary"),
            vmem_limit_bytes=vmem_limit,
        ),
        cost_estimate=cost,
    )(x_in, w_in)
    return out2d.reshape(*lead, dime)


def init_w_m(key, c, dime, dtype=jnp.float32):
    """Deterministic stand-in for nn.init.kaiming_uniform_(w, a=sqrt(5)).

    For a 2D weight (c, dime), PyTorch fan_in = dime, so
    bound = sqrt(6 / ((1 + a^2) * fan_in)) = 1 / sqrt(dime).
    (Parameter init / .cuda placement is host-side setup, not forward compute.)
    """
    bound = 1.0 / math.sqrt(dime)
    return jax.random.uniform(key, (c, dime), dtype, minval=-bound, maxval=bound)


if __name__ == "__main__":
    key = jax.random.PRNGKey(0)
    keys = jax.random.split(key, 10)

    # --- 1) main small demo (weight-resident path) ---------------------------
    batch, seq, c, dime = 2, 8, 32, 64
    x = jax.random.normal(keys[0], (batch, seq, c), dtype=jnp.float32)
    w = init_w_m(keys[1], c, dime)
    y = w_ju_forward(x, w)
    jax.block_until_ready(y)
    assert y.shape == (batch, seq, dime)
    assert jnp.allclose(y, jnp.matmul(x, w), atol=1e-5, rtol=1e-5)

    # --- 2) ragged shapes, resident path, no padding anywhere ----------------
    x2 = jax.random.normal(keys[2], (3, 5, 100), dtype=jnp.float32)
    w2 = init_w_m(keys[3], 100, 72)
    y2 = w_ju_forward(x2, w2)
    jax.block_until_ready(y2)
    assert y2.shape == (3, 5, 72)
    assert jnp.allclose(y2, jnp.matmul(x2, w2), atol=1e-4, rtol=1e-4)

    # --- 3) resident path with N split (single M tile -> 2 parallel tiles) ---
    x3 = jax.random.normal(keys[4], (2, 8, 64), dtype=jnp.float32)
    w3 = init_w_m(keys[5], 64, 384)
    y3 = w_ju_forward(x3, w3)
    jax.block_until_ready(y3)
    assert y3.shape == (2, 8, 384)
    assert jnp.allclose(y3, jnp.matmul(x3, w3), atol=1e-4, rtol=1e-4)

    # --- 4) K-streamed f32 path (direct output accumulation, K padding) ------
    x4 = jax.random.normal(keys[6], (4, 16, 640), dtype=jnp.float32)
    w4 = init_w_m(keys[7], 640, 384)
    y4 = w_ju_forward(x4, w4, tm=128, tn=128, tk=256, force_stream=True)
    jax.block_until_ready(y4)
    assert y4.shape == (4, 16, 384)
    assert jnp.allclose(y4, jnp.matmul(x4, w4), atol=1e-3, rtol=1e-3)

    # --- 5) K-streamed bf16 inputs (f32 scratch accumulator path) ------------
    x5 = jax.random.normal(keys[8], (2, 16, 512), dtype=jnp.float32).astype(jnp.bfloat16)
    w5 = init_w_m(keys[9], 512, 256).astype(jnp.bfloat16)
    y5 = w_ju_forward(x5, w5, tm=128, tn=128, tk=256, force_stream=True)
    jax.block_until_ready(y5)
    assert y5.shape == (2, 16, 256)
    ref5 = jnp.matmul(x5.astype(jnp.float32), w5.astype(jnp.float32))
    assert jnp.allclose(y5.astype(jnp.float32), ref5, atol=2e-2, rtol=2e-2)

    # --- 6) optional bf16 compute flag on f32 inputs -------------------------
    y6 = w_ju_forward(x, w, cast_to_bf16=True)
    jax.block_until_ready(y6)
    assert jnp.allclose(y6, jnp.matmul(x, w), atol=3e-2, rtol=3e-2)

    print("KERNEL_OK")
</pallas_src>

<mosaic_0001>
module attributes {stable_mosaic.version = 11 : i64} {
  func.func @_resident_kernel(%arg0: i32, %arg1: i32, %arg2: memref<16x32xf32, #tpu.memory_space<vmem>>, %arg3: memref<32x64xf32, #tpu.memory_space<vmem>>, %arg4: memref<16x64xf32, #tpu.memory_space<vmem>>) attributes {dimension_semantics = [#tpu.dimension_semantics<parallel>, #tpu.dimension_semantics<parallel>], iteration_bounds = array<i64: 1, 1>, scalar_prefetch = 0 : i64, scratch_operands = 0 : i64, tpu.core_type = #tpu.core_type<tc>, window_params = [{transform_indices = @transform_0, window_bounds = array<i64: 16, 32>}, {pipeline_mode = #tpu.pipeline_mode<synchronous>, transform_indices = @transform_1, window_bounds = array<i64: 32, 64>}, {transform_indices = @transform_2, window_bounds = array<i64: 16, 64>}]} {
    %c0 = arith.constant 0 : index
    %c0_0 = arith.constant 0 : index
    %0 = vector.load %arg2[%c0, %c0_0] : memref<16x32xf32, #tpu.memory_space<vmem>>, vector<16x32xf32>
    %c0_1 = arith.constant 0 : index
    %c0_2 = arith.constant 0 : index
    %1 = vector.load %arg3[%c0_1, %c0_2] : memref<32x64xf32, #tpu.memory_space<vmem>>, vector<32x64xf32>
    %cst = arith.constant dense<0.000000e+00> : vector<16x64xf32>
    %2 = tpu.matmul %0, %1, %cst {dimension_numbers = #tpu.dot_dimension_numbers<[1], [0], [0], [1], [0, 0, 1, 1], [], []>} : vector<16x32xf32>, vector<32x64xf32>, vector<16x64xf32> -> vector<16x64xf32>
    %c0_3 = arith.constant 0 : index
    %c0_4 = arith.constant 0 : index
    %3 = vector.load %arg4[%c0_3, %c0_4] : memref<16x64xf32, #tpu.memory_space<vmem>>, vector<16x64xf32>
    tpu.vector_store %arg4[%c0_3, %c0_4], %2 {strides = array<i32>} : memref<16x64xf32, #tpu.memory_space<vmem>>, vector<16x64xf32>,
    return
  }
  func.func @transform_0(%arg0: i32, %arg1: i32) -> (i32, i32) {
    %c0_i32 = arith.constant 0 : i32
    %c0_i32_0 = arith.constant 0 : i32
    return %arg1, %c0_i32 : i32, i32
  }
  func.func @transform_1(%arg0: i32, %arg1: i32) -> (i32, i32) {
    %c0_i32 = arith.constant 0 : i32
    %c0_i32_0 = arith.constant 0 : i32
    return %c0_i32, %arg0 : i32, i32
  }
  func.func @transform_2(%arg0: i32, %arg1: i32) -> (i32, i32) {
    %c0_i32 = arith.constant 0 : i32
    return %arg1, %arg0 : i32, i32
  }
}

</mosaic_0001>

<bundles_post_ra>
// kernel: w_ju_forward.1
= control target key start
LH: loop header
LB: loop body
LE: loop exit
PB: predicated region body
PF: predicated region fallthrough
CT: control target
= control target key end

     0   :  { %7 = vsyncpa [#allocation3], 0  ;;  %s318_s0 = inlined_call_operand.hbm [shape: f32[16,32], index: 0, kind: input, shape index: {}]   ;;  %s319_s1 = inlined_call_operand.hbm [shape: f32[32,64], index: 1, kind: input, shape index: {}]   ;;  %s320_s2 = inlined_call_operand.hbm [shape: f32[16,64], index: 2, kind: output, shape index: {}]  }
   0x1   :  { %8 = vsyncpa [#allocation6], 0 }
   0x2   :  { %9 = vsyncpa [#allocation4], 0  ;;  %s253_s9 = smov [#allocation2]   ;;  %s181_s13 = scalar_lea.hbm %s318_s0, 256 }
   0x3   :  { %s15_s10 = sshll.u32 %s253_s9, 4  ;;  %p182_p0 = scmp.ne.s32.totalorder %s318_s0, %s181_s13  ;;  %s16_s10 = int_to_ptr.vmem [resolvable:$true] %s15_s10 }
   0x4   :  { %p185_p1 = scmp.lt.u32.totalorder %s181_s13, %s318_s0 }
   0x6   :  { %p187_p2 = pnand %p185_p1, %p182_p0 }
   0x8   :  { %190 = shalt.err (!%p187_p2)
}
   0x9   :  { %s191_s18 = scalar_lea.vmem %s16_s10, 256  ;;  %p196_p4 = scmp.lt.s32.totalorder %s16_s10, %s16_s10 }
   0xa   :  { %p192_p3 = scmp.ne.s32.totalorder %s16_s10, %s191_s18  ;;  %p197_p5 = scmp.lt.s32.totalorder %s191_s18, %s191_s18 }
   0xc   :  { %p198_p6 = por %p197_p5, %p196_p4 }
   0xe   :  { %p199_p7 = pnand %p198_p6, %p192_p3 }
  0x10   :  { %202 = shalt.err (!%p199_p7)
}
  0x11   :  { %s254_s19 = smov 128   ;;  %s255_s20 = smov 8  }
  0x12   :  { %21 = dma.hbm_to_vmem [thread:$0]  %s318_s0, 256, %s16_s10, [#allocation3], %s254_s19, %s254_s19, %s255_s20  }
  0x13   :  { %s256_s23 = smov [#allocation5]   ;;  %s203_s27 = scalar_lea.hbm %s319_s1, 512 }
  0x14   :  { %s27_s24 = sshll.u32 %s256_s23, 4  ;;  %p204_p8 = scmp.ne.s32.totalorder %s319_s1, %s203_s27  ;;  %s28_s24 = int_to_ptr.vmem [resolvable:$true] %s27_s24 }
  0x15   :  { %p207_p9 = scmp.lt.u32.totalorder %s203_s27, %s319_s1 }
  0x17   :  { %p209_p10 = pnand %p207_p9, %p204_p8 }
  0x19   :  { %212 = shalt.err (!%p209_p10)
}
  0x1a   :  { %s213_s4 = scalar_lea.vmem %s28_s24, 512  ;;  %p218_p12 = scmp.lt.s32.totalorder %s28_s24, %s28_s24 }
  0x1b   :  { %p214_p11 = scmp.ne.s32.totalorder %s28_s24, %s213_s4  ;;  %p219_p13 = scmp.lt.s32.totalorder %s213_s4, %s213_s4 }
  0x1d   :  { %p220_p0 = por %p219_p13, %p218_p12 }
  0x1f   :  { %p221_p1 = pnand %p220_p0, %p214_p11 }
  0x21   :  { %224 = shalt.err (!%p221_p1)
}
  0x22   :  { %33 = dma.hbm_to_vmem [thread:$0]  %s319_s1, 512, %s28_s24, [#allocation6], %s254_s19, %s254_s19, %s255_s20  }
  0x23   :  { %247 = dma.done.wait [#allocation3], 256  }
  0x24   :  { %248 = vsyncadd [#allocation3], 4294967040 }
  0x25   :  { %249 = dma.done.wait [#allocation6], 512  }
  0x26   :  { %250 = vsyncadd [#allocation6], 4294966784  ;;  %vm46_vm0 = vcmask 261120   ;;  %v42_v0 = vld [vmem:[#allocation5] sm:$0xff]  ;;  %v43_v1 = vld [vmem:[#allocation5 + $0x8] sm:$0xff]  ;;  %s257_s1 = smov [#allocation7]  }
  0x27   :  { %v44_v2 = vld [vmem:[#allocation5 + $0x10] sm:$0xff]  ;;  %v168_v3 = vpack.c.bf16 %v43_v1, %v42_v0  ;;  %v45_v4 = vld [vmem:[#allocation5 + $0x18] sm:$0xff]  ;;  %s136_s6 = sshll.u32 %s257_s1, 4  ;;  %vm128_vm1 = vcmask 523264   ;;  %s137_s6 = int_to_ptr.vmem [resolvable:$true] %s136_s6 }
  0x28   :  { %v40_v5 = vld [vmem:[#allocation2] sm:$0xff]  ;;  %v172_v6 = vpack.c.bf16 %v45_v4, %v44_v2  ;;  %v41_v7 = vld [vmem:[#allocation2 + $0x8] sm:$0xff]  ;;  %s225_s7 = scalar_lea.vmem %s137_s6, 256  ;;  %p230_p3 = scmp.lt.s32.totalorder %s137_s6, %s137_s6 }
  0x29   :  { %165 = vmatprep.mubr.msk.f32.mxu0 %vm46_vm0, %v40_v5  ;;  %169 = vmatprep.subr.bf16.mxu0 %v168_v3  ;;  %p226_p2 = scmp.ne.s32.totalorder %s137_s6, %s225_s7  ;;  %p231_p4 = scmp.lt.s32.totalorder %s225_s7, %s225_s7 }
  0x2a   :  { %171 = vmatpush3.bf16.msra.mxu0 %v168_v3 }
  0x2b   :  { %173 = vmatprep.subr.bf16.mxu0 %v172_v6  ;;  %p232_p5 = por %p231_p4, %p230_p3 }
  0x2d   :  { %p233_p6 = pnand %p232_p5, %p226_p2 }
  0x2e   :  { %175 = vmatpush3.bf16.msra.mxu0 %v172_v6 }
  0x31   :  { %166 = vmatmul.mubr.msk.f32.vlgmr.msra.gmra.mrb[0].mxu0 %vm46_vm0, %v41_v7 }
 0x104   :  { %v167_v8 = vpop.f32.mrb[0].mxu0 }
 0x105   :  { %130 = vst.msk [vmem:[#allocation7 + $0x8] sm:$0xff] %vm128_vm1, %v167_v8  ;;  %v119_v9 = vpop.f32.mrb[1].mxu0 }
 0x106   :  { %129 = vst.msk [vmem:[#allocation7] sm:$0xff] %vm128_vm1, %v119_v9 }
 0x107   :  { %236 = shalt.err (!%p233_p6)
}
 0x108   :  { %s237_s10 = scalar_lea.hbm %s320_s2, 256 }
 0x109   :  { %p238_p7 = scmp.ne.s32.totalorder %s320_s2, %s237_s10  ;;  %p241_p8 = scmp.lt.u32.totalorder %s237_s10, %s320_s2 }
 0x10b   :  { %p243_p9 = pnand %p241_p8, %p238_p7 }
 0x10d   :  { %246 = shalt.err (!%p243_p9)
}
 0x10e   :  { %142 = dma.vmem_to_hbm [thread:$0]  %s137_s6, 256, %s320_s2, [#allocation4], %s254_s19, %s254_s19, %s255_s20  }
 0x10f   :  { %251 = dma.done.wait [#allocation4], 256  }
 0x110   :  { %252 = vsyncadd [#allocation4], 4294967040 }
 0x111   :  { %146 = vsyncpa [#allocation3], 1 }
 0x112   :  { %147 = vsyncpa [#allocation6], 1 }
 0x113   :  { %148 = vsyncpa [#allocation4], 1 }

</bundles_post_ra>
